<compile_context>
chip_gen: v7x
topology: tpu7x:2x2x1
jax: 0.10.0
libtpu: 0.0.40
codegen_flags: <defaults>
</compile_context>

<pallas_src>
import jax
import jax.numpy as jnp
from jax.experimental import pallas as pl
from jax.experimental.pallas import tpu as pltpu

_LANE = 128              # lane width: full-lane (unmasked) loads/stores
_SUBLANE = 16            # row multiple; covers f32 (8) and bf16 (16) packing
_MAX_BLOCK_ROWS = 2048   # 2048 x 128 x 4B = 1 MiB per block


def _scale_kernel(scale_ref, x_ref, o_ref):
    # scale_ref lives in SMEM (scalar prefetch); broadcast multiply on the VPU.
    o_ref[...] = (x_ref[...] * scale_ref[0]).astype(o_ref.dtype)


def _round_up(x, m):
    return ((x + m - 1) // m) * m


def scale_reg_pallas(x, scale_reg):
    """Pallas TPU forward of ScaleReg: out = x * scale_reg (scalar param)."""
    orig_shape = x.shape
    n = x.size
    flat = x.reshape(-1)

    # Lane-dense 2-D layout: (rows_padded, 128), rows padded to the block size.
    rows = max(1, -(-n // _LANE))
    block_rows = min(_MAX_BLOCK_ROWS, _round_up(rows, _SUBLANE))
    rows_padded = _round_up(rows, block_rows)
    n_padded = rows_padded * _LANE

    if n_padded != n:
        flat = jnp.pad(flat, (0, n_padded - n))
    x2d = flat.reshape(rows_padded, _LANE)

    scale = jnp.asarray(scale_reg, dtype=jnp.float32).reshape(1)

    out2d = pl.pallas_call(
        _scale_kernel,
        out_shape=jax.ShapeDtypeStruct((rows_padded, _LANE), x.dtype),
        grid_spec=pltpu.PrefetchScalarGridSpec(
            num_scalar_prefetch=1,
            grid=(rows_padded // block_rows,),
            in_specs=[pl.BlockSpec((block_rows, _LANE), lambda i, s: (i, 0))],
            out_specs=pl.BlockSpec((block_rows, _LANE), lambda i, s: (i, 0)),
        ),
        compiler_params=pltpu.CompilerParams(
            dimension_semantics=("parallel",)),
    )(scale, x2d)

    return out2d.reshape(-1)[:n].reshape(orig_shape)


if __name__ == "__main__":
    key = jax.random.PRNGKey(0)
    # Small detector-head-like regression feature map: (batch=2, ch=4, 16, 16).
    x = jax.random.normal(key, (2, 4, 16, 16), dtype=jnp.float32)

    # nn.Parameter(torch.ones([1]), requires_grad=False)
    scale = jnp.ones((1,), dtype=jnp.float32)

    out = scale_reg_pallas(x, scale)
    out = jax.block_until_ready(out)

    ref = x * scale
    assert out.shape == x.shape
    assert jnp.allclose(out, ref, rtol=1e-6, atol=1e-6), "identity-scale mismatch"

    # Also verify with a non-trivial scale to make sure the multiply is real.
    out2 = jax.block_until_ready(
        scale_reg_pallas(x, jnp.array([0.37], dtype=jnp.float32)))
    assert jnp.allclose(out2, x * 0.37, rtol=1e-6, atol=1e-6), "scaled mismatch"

    print("KERNEL_OK")
</pallas_src>

<mosaic_0001>
module attributes {stable_mosaic.version = 11 : i64} {
  func.func @_scale_kernel(%arg0: i32, %arg1: memref<1xf32, #tpu.memory_space<smem>>, %arg2: memref<16x128xf32, #tpu.memory_space<vmem>>, %arg3: memref<16x128xf32, #tpu.memory_space<vmem>>) attributes {dimension_semantics = [#tpu.dimension_semantics<parallel>], iteration_bounds = array<i64: 1>, scalar_prefetch = 1 : i64, scratch_operands = 0 : i64, tpu.core_type = #tpu.core_type<tc>, window_params = [{transform_indices = @transform_0, window_bounds = array<i64: 16, 128>}, {transform_indices = @transform_1, window_bounds = array<i64: 16, 128>}]} {
    %c0 = arith.constant 0 : index
    %c0_0 = arith.constant 0 : index
    %0 = vector.load %arg2[%c0, %c0_0] : memref<16x128xf32, #tpu.memory_space<vmem>>, vector<16x128xf32>
    %c0_1 = arith.constant 0 : index
    %1 = memref.load %arg1[%c0_1] : memref<1xf32, #tpu.memory_space<smem>>
    %2 = vector.broadcast %1 : f32 to vector<16x128xf32>
    %3 = arith.mulf %0, %2 : vector<16x128xf32>
    %c0_2 = arith.constant 0 : index
    %c0_3 = arith.constant 0 : index
    %4 = vector.load %arg3[%c0_2, %c0_3] : memref<16x128xf32, #tpu.memory_space<vmem>>, vector<16x128xf32>
    tpu.vector_store %arg3[%c0_2, %c0_3], %3 {strides = array<i32>} : memref<16x128xf32, #tpu.memory_space<vmem>>, vector<16x128xf32>,
    return
  }
  func.func @transform_0(%arg0: i32, %arg1: memref<1xf32, #tpu.memory_space<smem>>) -> (i32, i32) {
    %c0_i32 = arith.constant 0 : i32
    %c0_i32_0 = arith.constant 0 : i32
    return %arg0, %c0_i32 : i32, i32
  }
  func.func @transform_1(%arg0: i32, %arg1: memref<1xf32, #tpu.memory_space<smem>>) -> (i32, i32) {
    %c0_i32 = arith.constant 0 : i32
    %c0_i32_0 = arith.constant 0 : i32
    return %arg0, %c0_i32 : i32, i32
  }
}

</mosaic_0001>

<bundles_post_ra>
// kernel: tpu_custom_call.1
= control target key start
LH: loop header
LB: loop body
LE: loop exit
PB: predicated region body
PF: predicated region fallthrough
CT: control target
= control target key end

     0   :  { %8 = vsyncpa [#allocation5], 0  ;;  %s154_s0 = inlined_call_operand.<no memory space> [shape: f32[1], index: 0, kind: input, shape index: {}]   ;;  %s155_s1 = inlined_call_operand.hbm [shape: f32[16,128], index: 1, kind: input, shape index: {}]   ;;  %s156_s2 = inlined_call_operand.hbm [shape: f32[16,128], index: 2, kind: output, shape index: {}]  }
   0x1   :  { %9 = vsyncpa [#allocation6], 0  ;;  %s102_s9 = smov [#allocation4]   ;;  %s54_s13 = scalar_lea.hbm %s155_s1, 256 }
   0x2   :  { %s15_s10 = sshll.u32 %s102_s9, 4  ;;  %p55_p0 = scmp.ne.s32.totalorder %s155_s1, %s54_s13  ;;  %s16_s10 = int_to_ptr.vmem [resolvable:$true] %s15_s10 }
   0x3   :  { %p58_p1 = scmp.lt.u32.totalorder %s54_s13, %s155_s1 }
   0x5   :  { %p60_p2 = pnand %p58_p1, %p55_p0 }
   0x7   :  { %63 = shalt.err (!%p60_p2)
}
   0x8   :  { %s64_s18 = scalar_lea.vmem %s16_s10, 256  ;;  %p69_p4 = scmp.lt.s32.totalorder %s16_s10, %s16_s10 }
   0x9   :  { %p65_p3 = scmp.ne.s32.totalorder %s16_s10, %s64_s18  ;;  %p70_p5 = scmp.lt.s32.totalorder %s64_s18, %s64_s18 }
   0xb   :  { %p71_p6 = por %p70_p5, %p69_p4 }
   0xd   :  { %p72_p7 = pnand %p71_p6, %p65_p3 }
   0xf   :  { %75 = shalt.err (!%p72_p7)
}
  0x10   :  { %s103_s19 = smov 128   ;;  %s104_s20 = smov 8  }
  0x11   :  { %21 = dma.hbm_to_vmem [thread:$0]  %s155_s1, 256, %s16_s10, [#allocation5], %s103_s19, %s103_s19, %s104_s20  }
  0x12   :  { %98 = dma.done.wait [#allocation5], 256  }
  0x13   :  { %99 = vsyncadd [#allocation5], 4294967040  ;;  %v28_v0 = vstv %s154_s0  ;;  %s105_s25 = smov [#allocation7]   ;;  %v25_v1 = vld [vmem:[#allocation4] sm:$0xff]  ;;  %v26_v2 = vld [vmem:[#allocation4 + $0x8] sm:$0xff] }
  0x14   :  { %s38_s26 = sshll.u32 %s105_s25, 4  ;;  %v29_v3 = vmul.f32 %v28_v0, %v25_v1  ;;  %v30_v4 = vmul.f32 %v28_v0, %v26_v2  ;;  %s39_s26 = int_to_ptr.vmem [resolvable:$true] %s38_s26 }
  0x15   :  { %s76_s27 = scalar_lea.vmem %s39_s26, 256  ;;  %p81_p9 = scmp.lt.s32.totalorder %s39_s26, %s39_s26 }
  0x16   :  { %31 = vst [vmem:[#allocation7] sm:$0xff] %v29_v3  ;;  %32 = vst [vmem:[#allocation7 + $0x8] sm:$0xff] %v30_v4  ;;  %p77_p8 = scmp.ne.s32.totalorder %s39_s26, %s76_s27  ;;  %p82_p10 = scmp.lt.s32.totalorder %s76_s27, %s76_s27 }
  0x18   :  { %p83_p11 = por %p82_p10, %p81_p9 }
  0x1a   :  { %p84_p12 = pnand %p83_p11, %p77_p8 }
  0x1c   :  { %87 = shalt.err (!%p84_p12)
}
  0x1d   :  { %s88_s0 = scalar_lea.hbm %s156_s2, 256 }
  0x1e   :  { %p89_p13 = scmp.ne.s32.totalorder %s156_s2, %s88_s0  ;;  %p92_p0 = scmp.lt.u32.totalorder %s88_s0, %s156_s2 }
  0x20   :  { %p94_p1 = pnand %p92_p0, %p89_p13 }
  0x22   :  { %97 = shalt.err (!%p94_p1)
}
  0x23   :  { %44 = dma.vmem_to_hbm [thread:$0]  %s39_s26, 256, %s156_s2, [#allocation6], %s103_s19, %s103_s19, %s104_s20  }
  0x24   :  { %100 = dma.done.wait [#allocation6], 256  }
  0x25   :  { %101 = vsyncadd [#allocation6], 4294967040 }
  0x26   :  { %48 = vsyncpa [#allocation5], 1 }
  0x27   :  { %49 = vsyncpa [#allocation6], 1 }

</bundles_post_ra>
